<compile_context>
chip_gen: v6e
topology: v6e:2x2x1
jax: 0.10.0
libtpu: 0.0.40
codegen_flags: <defaults>
</compile_context>

<pallas_src>
import functools

import numpy as np
import jax
import jax.numpy as jnp
from jax.experimental import pallas as pl
from jax.experimental.pallas import tpu as pltpu


# ----------------------------------------------------------------------------
# Host-side helpers (exact PyTorch pooling / bilinear semantics as matrices)
# ----------------------------------------------------------------------------
def _round_up(x, m):
    return ((x + m - 1) // m) * m


def _adaptive_pool_matrix(in_size, out_size):
    """Row-stochastic matrix implementing nn.AdaptiveAvgPool (1-D factor)."""
    m = np.zeros((out_size, in_size), dtype=np.float32)
    for i in range(out_size):
        start = (i * in_size) // out_size
        end = -(-((i + 1) * in_size) // out_size)  # ceil
        m[i, start:end] = 1.0 / (end - start)
    return m


def _bilinear_upsample_matrix(out_size, in_size):
    """F.upsample / interpolate mode='bilinear', align_corners=False (1-D)."""
    m = np.zeros((out_size, in_size), dtype=np.float32)
    scale = in_size / out_size
    for i in range(out_size):
        src = max((i + 0.5) * scale - 0.5, 0.0)
        i0 = min(int(np.floor(src)), in_size - 1)
        i1 = min(i0 + 1, in_size - 1)
        lam = src - i0
        m[i, i0] += 1.0 - lam
        m[i, i1] += lam
    return m


def _build_upsample_basis(H, W, sizes, s2_pad, hw_pad):
    """U[k, o*max_s+p, i*W+j] = A_h^k[i,o] * A_w^k[j,p]  (zero outside s_k^2).

    With pooled-conv tensors x[n, k, c, q] (q = o*max_s+p), the in-kernel
    product x[n, k] @ U[k] reproduces F.upsample(stage_k(feats), (H, W)).
    Rows 36..s2_pad and columns H*W..hw_pad are zero padding.
    """
    max_s = max(sizes)
    U = np.zeros((len(sizes), s2_pad, hw_pad), dtype=np.float32)
    for k, s in enumerate(sizes):
        A_h = _bilinear_upsample_matrix(H, s)          # (H, s)
        A_w = _bilinear_upsample_matrix(W, s)          # (W, s)
        tmp = np.zeros((max_s, max_s, H, W), dtype=np.float32)
        tmp[:s, :s] = np.einsum('io,jp->opij', A_h, A_w)
        U[k, :max_s * max_s, :H * W] = tmp.reshape(max_s * max_s, H * W)
    return U


def _build_scale_inputs(feats_nchw, scale_weights, sizes, s2_pad):
    """Adaptive-avg-pool + per-scale 1x1 conv, packed as (N, S, C, s2_pad)."""
    N, C, H, W = feats_nchw.shape
    max_s = max(sizes)
    packed = []
    for s, wsc in zip(sizes, scale_weights):
        P_h = jnp.asarray(_adaptive_pool_matrix(H, s))
        P_w = jnp.asarray(_adaptive_pool_matrix(W, s))
        pooled = jnp.einsum('oh,nchw,pw->ncop', P_h, feats_nchw, P_w)
        conv = jnp.einsum('kc,ncop->nkop', wsc, pooled)   # 1x1 conv, no bias
        pad = jnp.zeros((N, C, max_s, max_s), feats_nchw.dtype)
        pad = pad.at[:, :, :s, :s].set(conv)
        flat = pad.reshape(N, C, max_s * max_s)
        flat = jnp.pad(flat, ((0, 0), (0, 0), (0, s2_pad - max_s * max_s)))
        packed.append(flat)
    return jnp.stack(packed, axis=1)                      # (N, S, C, s2_pad)


# ----------------------------------------------------------------------------
# Generation-aware planning helpers
# ----------------------------------------------------------------------------
def _bf16_vpu_default():
    """bf16 VPU/EUP available? (v6e / v7x yes; v5e and older no)."""
    try:
        kind = jax.devices()[0].device_kind.lower()
    except Exception:
        return False
    return any(tag in kind for tag in ("v6", "v7", "7x"))


def _vmem_ceiling_bytes():
    """Scoped-VMEM ceiling derived from the physical VMEM of this generation."""
    phys = None
    try:
        info = pltpu.get_tpu_info()
        phys = int(getattr(info, "vmem_capacity_bytes", 0)) or None
    except Exception:
        phys = None
    if phys is None:
        phys = 64 * 2**20          # conservative: assume a 64 MiB (v7x-class) part
    # Leave headroom for Mosaic internal scratch; never ask for > ~100 MiB.
    return int(max(32 * 2**20, min(phys - 8 * 2**20, 100 * 2**20)))


def _vmem_need_bytes(C, S, S2, OUT, T, cdt_bytes, out_bytes):
    """Rough per-step VMEM requirement (streamed blocks + consts + f32 temps)."""
    streamed = T * (C * cdt_bytes              # feats tile
                    + S * S2 * cdt_bytes       # bilinear basis block
                    + OUT * out_bytes)         # output tile
    streamed += 2 * S * C * S2 * cdt_bytes     # pooled-conv + wn@pooled-conv blocks
    resident = (C * C + 2 * C * OUT) * cdt_bytes + 4 * (C + OUT)  # single-buffered consts
    # In-kernel f32 vector temporaries: wnf, ms, wnms, w, num, den, overall (~7*C*T)
    # plus the f32 output accumulator and its cast (~2*OUT*T).
    temps = 4 * T * (7 * C + 2 * OUT)
    return 2 * streamed + resident + temps + (2 << 20)   # + margin


def _choose_tile_and_pad(HW, N, desired, min_cells=4):
    """Lane-aligned pixel tile that divides the 128-padded pixel count.

    Keeps >= min_cells grid cells when possible so megacore parts (2 TCs on
    v7x) get at least 2 cells per core.
    """
    hwp = _round_up(HW, 128)
    q = hwp // 128
    dmax = max(1, min(desired // 128, q))
    best = 1
    for d in range(1, q + 1):
        if q % d == 0 and d <= dmax and N * (q // d) >= min_cells:
            best = max(best, d)
    if N * q < min_cells:
        # Not enough pixels for min_cells no matter what; take the biggest tile.
        for d in range(1, q + 1):
            if q % d == 0 and d <= dmax:
                best = max(best, d)
    return 128 * best, hwp


def _plan_tile(HW, N, C, S, S2, OUT, desired, cdt, out_dtype, ceiling):
    db = jnp.dtype(cdt).itemsize
    ob = jnp.dtype(out_dtype).itemsize
    desired = max(128, _round_up(min(desired, _round_up(HW, 128)), 128))
    while True:
        tile, hwp = _choose_tile_and_pad(HW, N, desired)
        if tile == 128 or _vmem_need_bytes(C, S, S2, OUT, tile, db, ob) <= ceiling:
            return tile, hwp
        desired = max(128, _round_up(tile // 2, 128))   # strictly decreasing


# ----------------------------------------------------------------------------
# Pallas kernel
# ----------------------------------------------------------------------------
def _make_kernel(num_scales, compute_dtype, sig_dtype, approx_recip):
    cdt = compute_dtype

    def kernel(feats_ref, u_ref, conved_ref, wnconved_ref, wn_ref, bn_ref,
               wb1_ref, wb2_ref, bb_ref, o_ref):
        f = feats_ref[0]                                   # (C, T) compute dtype

        # weight_net applied ONCE per tile (the big C*C*T matmul), f32 accum.
        wnf = jnp.dot(wn_ref[...], f,
                      preferred_element_type=jnp.float32) + bn_ref[...]

        num = None
        den = None
        for k in range(num_scales):                        # static unroll (4)
            u_k = u_ref[k]                                 # (S2, T)
            # Reconstruct the upsampled scale and its weight_net image from the
            # tiny pooled tensors: two K=S2 matmuls, lane-dense N=T.
            ms = jnp.dot(conved_ref[0, k], u_k,
                         preferred_element_type=jnp.float32)       # (C, T) f32
            wnms = jnp.dot(wnconved_ref[0, k], u_k,
                           preferred_element_type=jnp.float32)     # (C, T) f32
            logits = wnf - wnms                            # == wn @ (f - ms) + bn
            w = jax.nn.sigmoid(logits.astype(sig_dtype)).astype(jnp.float32)
            num = ms * w if num is None else num + ms * w
            den = w if den is None else den + w

        if approx_recip:
            overall = num * pl.reciprocal(den, approx=True)
        else:
            overall = num / den                            # exact path (f32 checks)

        # Split bottleneck: same MXU work as the concat form, no (2C, T) copy.
        out = (jnp.dot(wb1_ref[...], overall.astype(cdt),
                       preferred_element_type=jnp.float32)
               + jnp.dot(wb2_ref[...], f,
                         preferred_element_type=jnp.float32))
        out = out + bb_ref[...]                            # (OUT, 1) broadcast
        o_ref[0] = jnp.maximum(out, 0.0).astype(o_ref.dtype)

    return kernel


def _const_block_spec(shape):
    """BlockSpec for a grid-invariant operand; single-buffered when supported."""
    kwargs = {}
    if hasattr(pl, "Buffered"):
        kwargs["pipeline_mode"] = pl.Buffered(1)
    return pl.BlockSpec(shape, lambda t, n: (0,) * len(shape), **kwargs)


def _contextual_pallas(feats_cm, U, conved, wnconved, wn, bn, wb1, wb2, bb, *,
                       tile_hw, out_dtype, vmem_limit_bytes,
                       compute_dtype, sig_dtype, approx_recip):
    """feats_cm: (N,C,HWp); U: (S,S2,HWp); conved/wnconved: (N,S,C,S2)."""
    N, C, HWp = feats_cm.shape
    S, S2, _ = U.shape
    OUT = bb.shape[0]
    assert HWp % tile_hw == 0 and tile_hw % 128 == 0
    # Pixel tiles on the outer axis => the U block stays VMEM-resident across
    # the inner batch loop; the tiny pooled tensors are re-fetched per image.
    grid = (HWp // tile_hw, N)

    in_specs = [
        pl.BlockSpec((1, C, tile_hw), lambda t, n: (n, 0, t)),     # feats tile
        pl.BlockSpec((S, S2, tile_hw), lambda t, n: (0, 0, t)),    # bilinear basis
        pl.BlockSpec((1, S, C, S2), lambda t, n: (n, 0, 0, 0)),    # pooled + 1x1 conv
        pl.BlockSpec((1, S, C, S2), lambda t, n: (n, 0, 0, 0)),    # wn @ (pooled conv)
        _const_block_spec((C, C)),                                 # weight_net W
        _const_block_spec((C, 1)),                                 # weight_net b
        _const_block_spec((OUT, C)),                               # bottleneck W (overall)
        _const_block_spec((OUT, C)),                               # bottleneck W (feats)
        _const_block_spec((OUT, 1)),                               # bottleneck b
    ]

    kernel = _make_kernel(S, compute_dtype, sig_dtype, approx_recip)
    return pl.pallas_call(
        kernel,
        out_shape=jax.ShapeDtypeStruct((N, OUT, HWp), out_dtype),
        grid_spec=pltpu.PrefetchScalarGridSpec(
            num_scalar_prefetch=0,
            grid=grid,
            in_specs=in_specs,
            # Output last dim = pixel tile (multiple of 128) -> lane-dense vst.
            out_specs=pl.BlockSpec((1, OUT, tile_hw), lambda t, n: (n, 0, t)),
        ),
        compiler_params=pltpu.CompilerParams(
            dimension_semantics=("parallel", "parallel"),
            vmem_limit_bytes=int(vmem_limit_bytes),
        ),
    )(feats_cm, U, conved, wnconved, wn, bn, wb1, wb2, bb)


# ----------------------------------------------------------------------------
# Full forward (glue + kernel)
# ----------------------------------------------------------------------------
def contextual_module_forward(feats_nchw, params, sizes=(1, 2, 3, 6), *,
                              tile_hw=1024, compute_dtype=jnp.bfloat16,
                              bf16_vpu=None):
    """Pallas-accelerated ContextualModule.forward (NCHW in, NCHW out)."""
    N, C, H, W = feats_nchw.shape
    OUT = params['bottleneck_b'].shape[0]
    S = len(sizes)
    HW = H * W
    cdt = jnp.dtype(compute_dtype)
    out_dtype = feats_nchw.dtype
    max_s = max(sizes)
    S2 = _round_up(max_s * max_s, 16)          # 36 -> 48: sublane-clean operands

    if bf16_vpu is None:
        bf16_vpu = _bf16_vpu_default()
    sig_dtype = jnp.bfloat16 if (bf16_vpu and cdt == jnp.dtype(jnp.bfloat16)) \
        else jnp.float32
    approx_recip = (cdt != jnp.dtype(jnp.float32))

    ceiling = _vmem_ceiling_bytes()
    tile, HWp = _plan_tile(HW, N, C, S, S2, OUT, tile_hw, cdt, out_dtype, ceiling)

    # Tiny XLA glue: adaptive pools + per-scale 1x1 conv (<= C x 48 outputs),
    # plus the algebraically-distributed weight_net applied to those tiny maps.
    conved = _build_scale_inputs(feats_nchw, params['scale_w'], sizes, S2)  # f32
    wn = params['weight_net_w']
    wnconved = jnp.einsum('kc,nscq->nskq', wn, conved)                      # f32

    # Channel-major flattening (pure reshape of NCHW), cast BEFORE padding so
    # the wrapper pad pass is a single bf16 pass; pad only to the next 128.
    feats_cm = feats_nchw.reshape(N, C, HW).astype(cdt)
    if HWp != HW:   # padded columns are division-safe (den >= 2 there)
        feats_cm = jnp.pad(feats_cm, ((0, 0), (0, 0), (0, HWp - HW)))

    U = jnp.asarray(_build_upsample_basis(H, W, sizes, S2, HWp), dtype=cdt)

    bn = params['weight_net_b'].reshape(C, 1).astype(jnp.float32)
    wb = params['bottleneck_w']                                   # (OUT, 2C)
    bb = params['bottleneck_b'].reshape(OUT, 1).astype(jnp.float32)
    wb1 = wb[:, :C].astype(cdt)
    wb2 = wb[:, C:].astype(cdt)

    out_cm = _contextual_pallas(
        feats_cm, U, conved.astype(cdt), wnconved.astype(cdt),
        wn.astype(cdt), bn, wb1, wb2, bb,
        tile_hw=tile, out_dtype=out_dtype, vmem_limit_bytes=ceiling,
        compute_dtype=cdt, sig_dtype=sig_dtype, approx_recip=approx_recip)
    return out_cm[:, :, :HW].reshape(N, OUT, H, W)


# ----------------------------------------------------------------------------
# Pure-JAX reference of the same module math (for correctness checks)
# ----------------------------------------------------------------------------
def make_multi_scale(feats_nchw, scale_weights, sizes, H, W):
    out = []
    for s, wsc in zip(sizes, scale_weights):
        P_h = jnp.asarray(_adaptive_pool_matrix(H, s))
        P_w = jnp.asarray(_adaptive_pool_matrix(W, s))
        A_h = jnp.asarray(_bilinear_upsample_matrix(H, s))
        A_w = jnp.asarray(_bilinear_upsample_matrix(W, s))
        pooled = jnp.einsum('oh,nchw,pw->ncop', P_h, feats_nchw, P_w)
        conved = jnp.einsum('kc,ncop->nkop', wsc, pooled)
        up = jnp.einsum('io,nkop,jp->nkij', A_h, conved, A_w)
        out.append(up)
    return out


def reference_forward(feats_nchw, params, sizes=(1, 2, 3, 6)):
    N, C, H, W = feats_nchw.shape
    multi_scales = make_multi_scale(feats_nchw, params['scale_w'], sizes, H, W)
    wn, bn = params['weight_net_w'], params['weight_net_b']
    weights = []
    for ms in multi_scales:
        d = feats_nchw - ms
        logit = jnp.einsum('kc,nchw->nkhw', wn, d) + bn[None, :, None, None]
        weights.append(jax.nn.sigmoid(logit))
    num = sum(m * w for m, w in zip(multi_scales, weights))
    den = sum(weights)
    overall = num / den
    cat = jnp.concatenate([overall, feats_nchw], axis=1)
    wb, bb = params['bottleneck_w'], params['bottleneck_b']
    out = jnp.einsum('kc,nchw->nkhw', wb, cat) + bb[None, :, None, None]
    return jnp.maximum(out, 0.0)


# ----------------------------------------------------------------------------
# Deterministic parameter init (matches the module: normal std=0.01, bias 0)
# ----------------------------------------------------------------------------
def init_params(key, features, out_features, sizes):
    keys = jax.random.split(key, len(sizes) + 2)
    scale_w = [0.01 * jax.random.normal(keys[i], (features, features),
                                        dtype=jnp.float32)
               for i in range(len(sizes))]
    weight_net_w = 0.01 * jax.random.normal(keys[-2], (features, features),
                                            dtype=jnp.float32)
    weight_net_b = jnp.zeros((features,), dtype=jnp.float32)
    bottleneck_w = 0.01 * jax.random.normal(
        keys[-1], (out_features, 2 * features), dtype=jnp.float32)
    bottleneck_b = jnp.zeros((out_features,), dtype=jnp.float32)
    return dict(scale_w=scale_w, weight_net_w=weight_net_w,
                weight_net_b=weight_net_b, bottleneck_w=bottleneck_w,
                bottleneck_b=bottleneck_b)


if __name__ == "__main__":
    key = jax.random.PRNGKey(0)
    k_in, k_par, k_in2, k_par2 = jax.random.split(key, 4)

    # --- Small demo consistent with the module: N=2, C=4, 16x16, OUT=32 -----
    N, C, H, W = 2, 4, 16, 16
    OUT = 32
    SIZES = (1, 2, 3, 6)

    feats = jax.random.normal(k_in, (N, C, H, W), dtype=jnp.float32)
    params = init_params(k_par, C, OUT, SIZES)
    ref = jax.block_until_ready(reference_forward(feats, params, SIZES))

    # f32 compute config: tight semantics check of the kernel path.
    fwd_f32 = jax.jit(functools.partial(contextual_module_forward, sizes=SIZES,
                                        compute_dtype=jnp.float32))
    out_f32 = jax.block_until_ready(fwd_f32(feats, params))
    assert out_f32.shape == (N, OUT, H, W)
    np.testing.assert_allclose(np.asarray(out_f32), np.asarray(ref),
                               rtol=1e-4, atol=1e-5)

    # bf16-storage config (the recommended fast path).
    fwd_bf16 = jax.jit(functools.partial(contextual_module_forward, sizes=SIZES,
                                         compute_dtype=jnp.bfloat16))
    out_bf16 = jax.block_until_ready(fwd_bf16(feats, params))
    np.testing.assert_allclose(np.asarray(out_bf16), np.asarray(ref),
                               rtol=5e-2, atol=1e-2)

    # --- Second shape: exercises pixel padding and C a multiple of 128 ------
    N2, C2, H2, W2, OUT2 = 1, 128, 7, 9, 64
    feats2 = jax.random.normal(k_in2, (N2, C2, H2, W2), dtype=jnp.float32)
    params2 = init_params(k_par2, C2, OUT2, SIZES)
    ref2 = jax.block_until_ready(reference_forward(feats2, params2, SIZES))
    fwd2 = jax.jit(functools.partial(contextual_module_forward, sizes=SIZES,
                                     compute_dtype=jnp.float32))
    out2 = jax.block_until_ready(fwd2(feats2, params2))
    np.testing.assert_allclose(np.asarray(out2), np.asarray(ref2),
                               rtol=1e-4, atol=1e-5)

    print("KERNEL_OK")
</pallas_src>

<mosaic_0001>
module attributes {stable_mosaic.version = 11 : i64} {
  func.func @kernel(%arg0: i32, %arg1: i32, %arg2: memref<1x4x128xf32, #tpu.memory_space<vmem>>, %arg3: memref<4x48x128xf32, #tpu.memory_space<vmem>>, %arg4: memref<1x4x4x48xf32, #tpu.memory_space<vmem>>, %arg5: memref<1x4x4x48xf32, #tpu.memory_space<vmem>>, %arg6: memref<4x4xf32, #tpu.memory_space<vmem>>, %arg7: memref<4x1xf32, #tpu.memory_space<vmem>>, %arg8: memref<32x4xf32, #tpu.memory_space<vmem>>, %arg9: memref<32x4xf32, #tpu.memory_space<vmem>>, %arg10: memref<32x1xf32, #tpu.memory_space<vmem>>, %arg11: memref<1x32x128xf32, #tpu.memory_space<vmem>>) attributes {dimension_semantics = [#tpu.dimension_semantics<parallel>, #tpu.dimension_semantics<parallel>], iteration_bounds = array<i64: 2, 2>, scalar_prefetch = 0 : i64, scratch_operands = 0 : i64, tpu.core_type = #tpu.core_type<tc>, window_params = [{transform_indices = @transform_0, window_bounds = array<i64: 1, 4, 128>}, {transform_indices = @transform_1, window_bounds = array<i64: 4, 48, 128>}, {transform_indices = @transform_2, window_bounds = array<i64: 1, 4, 4, 48>}, {transform_indices = @transform_3, window_bounds = array<i64: 1, 4, 4, 48>}, {pipeline_mode = #tpu.pipeline_mode<synchronous>, transform_indices = @transform_4, window_bounds = array<i64: 4, 4>}, {pipeline_mode = #tpu.pipeline_mode<synchronous>, transform_indices = @transform_5, window_bounds = array<i64: 4, 1>}, {pipeline_mode = #tpu.pipeline_mode<synchronous>, transform_indices = @transform_6, window_bounds = array<i64: 32, 4>}, {pipeline_mode = #tpu.pipeline_mode<synchronous>, transform_indices = @transform_7, window_bounds = array<i64: 32, 4>}, {pipeline_mode = #tpu.pipeline_mode<synchronous>, transform_indices = @transform_8, window_bounds = array<i64: 32, 1>}, {transform_indices = @transform_9, window_bounds = array<i64: 1, 32, 128>}]} {
    %c0 = arith.constant 0 : index
    %c0_0 = arith.constant 0 : index
    %c0_1 = arith.constant 0 : index
    %0 = vector.load %arg2[%c0, %c0_0, %c0_1] : memref<1x4x128xf32, #tpu.memory_space<vmem>>, vector<1x4x128xf32>
    %1 = vector.shape_cast %0 : vector<1x4x128xf32> to vector<4x128xf32>
    %c0_2 = arith.constant 0 : index
    %c0_3 = arith.constant 0 : index
    %2 = vector.load %arg6[%c0_2, %c0_3] : memref<4x4xf32, #tpu.memory_space<vmem>>, vector<4x4xf32>
    %cst = arith.constant dense<0.000000e+00> : vector<4x128xf32>
    %3 = tpu.matmul %2, %1, %cst {dimension_numbers = #tpu.dot_dimension_numbers<[1], [0], [0], [1], [0, 0, 1, 1], [], []>} : vector<4x4xf32>, vector<4x128xf32>, vector<4x128xf32> -> vector<4x128xf32>
    %c0_4 = arith.constant 0 : index
    %c0_5 = arith.constant 0 : index
    %4 = vector.load %arg7[%c0_4, %c0_5] : memref<4x1xf32, #tpu.memory_space<vmem>>, vector<4x1xf32>
    %5 = vector.broadcast %4 : vector<4x1xf32> to vector<4x128xf32>
    %6 = arith.addf %3, %5 : vector<4x128xf32>
    %c0_6 = arith.constant 0 : index
    %c0_7 = arith.constant 0 : index
    %c0_8 = arith.constant 0 : index
    %7 = vector.load %arg3[%c0_6, %c0_7, %c0_8] : memref<4x48x128xf32, #tpu.memory_space<vmem>>, vector<1x48x128xf32>
    %8 = vector.shape_cast %7 : vector<1x48x128xf32> to vector<48x128xf32>
    %c0_9 = arith.constant 0 : index
    %c0_10 = arith.constant 0 : index
    %c0_11 = arith.constant 0 : index
    %c0_12 = arith.constant 0 : index
    %9 = vector.load %arg4[%c0_9, %c0_10, %c0_11, %c0_12] : memref<1x4x4x48xf32, #tpu.memory_space<vmem>>, vector<1x1x4x48xf32>
    %10 = vector.shape_cast %9 : vector<1x1x4x48xf32> to vector<4x48xf32>
    %cst_13 = arith.constant dense<0.000000e+00> : vector<4x128xf32>
    %11 = tpu.matmul %10, %8, %cst_13 {dimension_numbers = #tpu.dot_dimension_numbers<[1], [0], [0], [1], [0, 0, 1, 1], [], []>} : vector<4x48xf32>, vector<48x128xf32>, vector<4x128xf32> -> vector<4x128xf32>
    %c0_14 = arith.constant 0 : index
    %c0_15 = arith.constant 0 : index
    %c0_16 = arith.constant 0 : index
    %c0_17 = arith.constant 0 : index
    %12 = vector.load %arg5[%c0_14, %c0_15, %c0_16, %c0_17] : memref<1x4x4x48xf32, #tpu.memory_space<vmem>>, vector<1x1x4x48xf32>
    %13 = vector.shape_cast %12 : vector<1x1x4x48xf32> to vector<4x48xf32>
    %cst_18 = arith.constant dense<0.000000e+00> : vector<4x128xf32>
    %14 = tpu.matmul %13, %8, %cst_18 {dimension_numbers = #tpu.dot_dimension_numbers<[1], [0], [0], [1], [0, 0, 1, 1], [], []>} : vector<4x48xf32>, vector<48x128xf32>, vector<4x128xf32> -> vector<4x128xf32>
    %15 = arith.subf %6, %14 : vector<4x128xf32>
    %16 = arith.negf %15 : vector<4x128xf32>
    %17 = math.exp %16 : vector<4x128xf32>
    %cst_19 = arith.constant 1.000000e+00 : f32
    %18 = vector.broadcast %cst_19 : f32 to vector<4x128xf32>
    %19 = arith.addf %18, %17 : vector<4x128xf32>
    %20 = arith.divf %18, %19 : vector<4x128xf32>
    %21 = arith.mulf %11, %20 : vector<4x128xf32>
    %c1 = arith.constant 1 : index
    %c0_20 = arith.constant 0 : index
    %c0_21 = arith.constant 0 : index
    %22 = vector.load %arg3[%c1, %c0_20, %c0_21] : memref<4x48x128xf32, #tpu.memory_space<vmem>>, vector<1x48x128xf32>
    %23 = vector.shape_cast %22 : vector<1x48x128xf32> to vector<48x128xf32>
    %c0_22 = arith.constant 0 : index
    %c1_23 = arith.constant 1 : index
    %c0_24 = arith.constant 0 : index
    %c0_25 = arith.constant 0 : index
    %24 = vector.load %arg4[%c0_22, %c1_23, %c0_24, %c0_25] : memref<1x4x4x48xf32, #tpu.memory_space<vmem>>, vector<1x1x4x48xf32>
    %25 = vector.shape_cast %24 : vector<1x1x4x48xf32> to vector<4x48xf32>
    %cst_26 = arith.constant dense<0.000000e+00> : vector<4x128xf32>
    %26 = tpu.matmul %25, %23, %cst_26 {dimension_numbers = #tpu.dot_dimension_numbers<[1], [0], [0], [1], [0, 0, 1, 1], [], []>} : vector<4x48xf32>, vector<48x128xf32>, vector<4x128xf32> -> vector<4x128xf32>
    %c0_27 = arith.constant 0 : index
    %c1_28 = arith.constant 1 : index
    %c0_29 = arith.constant 0 : index
    %c0_30 = arith.constant 0 : index
    %27 = vector.load %arg5[%c0_27, %c1_28, %c0_29, %c0_30] : memref<1x4x4x48xf32, #tpu.memory_space<vmem>>, vector<1x1x4x48xf32>
    %28 = vector.shape_cast %27 : vector<1x1x4x48xf32> to vector<4x48xf32>
    %cst_31 = arith.constant dense<0.000000e+00> : vector<4x128xf32>
    %29 = tpu.matmul %28, %23, %cst_31 {dimension_numbers = #tpu.dot_dimension_numbers<[1], [0], [0], [1], [0, 0, 1, 1], [], []>} : vector<4x48xf32>, vector<48x128xf32>, vector<4x128xf32> -> vector<4x128xf32>
    %30 = arith.subf %6, %29 : vector<4x128xf32>
    %31 = arith.negf %30 : vector<4x128xf32>
    %32 = math.exp %31 : vector<4x128xf32>
    %cst_32 = arith.constant 1.000000e+00 : f32
    %33 = vector.broadcast %cst_32 : f32 to vector<4x128xf32>
    %34 = arith.addf %33, %32 : vector<4x128xf32>
    %35 = arith.divf %33, %34 : vector<4x128xf32>
    %36 = arith.mulf %26, %35 : vector<4x128xf32>
    %37 = arith.addf %21, %36 : vector<4x128xf32>
    %38 = arith.addf %20, %35 : vector<4x128xf32>
    %c2 = arith.constant 2 : index
    %c0_33 = arith.constant 0 : index
    %c0_34 = arith.constant 0 : index
    %39 = vector.load %arg3[%c2, %c0_33, %c0_34] : memref<4x48x128xf32, #tpu.memory_space<vmem>>, vector<1x48x128xf32>
    %40 = vector.shape_cast %39 : vector<1x48x128xf32> to vector<48x128xf32>
    %c0_35 = arith.constant 0 : index
    %c2_36 = arith.constant 2 : index
    %c0_37 = arith.constant 0 : index
    %c0_38 = arith.constant 0 : index
    %41 = vector.load %arg4[%c0_35, %c2_36, %c0_37, %c0_38] : memref<1x4x4x48xf32, #tpu.memory_space<vmem>>, vector<1x1x4x48xf32>
    %42 = vector.shape_cast %41 : vector<1x1x4x48xf32> to vector<4x48xf32>
    %cst_39 = arith.constant dense<0.000000e+00> : vector<4x128xf32>
    %43 = tpu.matmul %42, %40, %cst_39 {dimension_numbers = #tpu.dot_dimension_numbers<[1], [0], [0], [1], [0, 0, 1, 1], [], []>} : vector<4x48xf32>, vector<48x128xf32>, vector<4x128xf32> -> vector<4x128xf32>
    %c0_40 = arith.constant 0 : index
    %c2_41 = arith.constant 2 : index
    %c0_42 = arith.constant 0 : index
    %c0_43 = arith.constant 0 : index
    %44 = vector.load %arg5[%c0_40, %c2_41, %c0_42, %c0_43] : memref<1x4x4x48xf32, #tpu.memory_space<vmem>>, vector<1x1x4x48xf32>
    %45 = vector.shape_cast %44 : vector<1x1x4x48xf32> to vector<4x48xf32>
    %cst_44 = arith.constant dense<0.000000e+00> : vector<4x128xf32>
    %46 = tpu.matmul %45, %40, %cst_44 {dimension_numbers = #tpu.dot_dimension_numbers<[1], [0], [0], [1], [0, 0, 1, 1], [], []>} : vector<4x48xf32>, vector<48x128xf32>, vector<4x128xf32> -> vector<4x128xf32>
    %47 = arith.subf %6, %46 : vector<4x128xf32>
    %48 = arith.negf %47 : vector<4x128xf32>
    %49 = math.exp %48 : vector<4x128xf32>
    %cst_45 = arith.constant 1.000000e+00 : f32
    %50 = vector.broadcast %cst_45 : f32 to vector<4x128xf32>
    %51 = arith.addf %50, %49 : vector<4x128xf32>
    %52 = arith.divf %50, %51 : vector<4x128xf32>
    %53 = arith.mulf %43, %52 : vector<4x128xf32>
    %54 = arith.addf %37, %53 : vector<4x128xf32>
    %55 = arith.addf %38, %52 : vector<4x128xf32>
    %c3 = arith.constant 3 : index
    %c0_46 = arith.constant 0 : index
    %c0_47 = arith.constant 0 : index
    %56 = vector.load %arg3[%c3, %c0_46, %c0_47] : memref<4x48x128xf32, #tpu.memory_space<vmem>>, vector<1x48x128xf32>
    %57 = vector.shape_cast %56 : vector<1x48x128xf32> to vector<48x128xf32>
    %c0_48 = arith.constant 0 : index
    %c3_49 = arith.constant 3 : index
    %c0_50 = arith.constant 0 : index
    %c0_51 = arith.constant 0 : index
    %58 = vector.load %arg4[%c0_48, %c3_49, %c0_50, %c0_51] : memref<1x4x4x48xf32, #tpu.memory_space<vmem>>, vector<1x1x4x48xf32>
    %59 = vector.shape_cast %58 : vector<1x1x4x48xf32> to vector<4x48xf32>
    %cst_52 = arith.constant dense<0.000000e+00> : vector<4x128xf32>
    %60 = tpu.matmul %59, %57, %cst_52 {dimension_numbers = #tpu.dot_dimension_numbers<[1], [0], [0], [1], [0, 0, 1, 1], [], []>} : vector<4x48xf32>, vector<48x128xf32>, vector<4x128xf32> -> vector<4x128xf32>
    %c0_53 = arith.constant 0 : index
    %c3_54 = arith.constant 3 : index
    %c0_55 = arith.constant 0 : index
    %c0_56 = arith.constant 0 : index
    %61 = vector.load %arg5[%c0_53, %c3_54, %c0_55, %c0_56] : memref<1x4x4x48xf32, #tpu.memory_space<vmem>>, vector<1x1x4x48xf32>
    %62 = vector.shape_cast %61 : vector<1x1x4x48xf32> to vector<4x48xf32>
    %cst_57 = arith.constant dense<0.000000e+00> : vector<4x128xf32>
    %63 = tpu.matmul %62, %57, %cst_57 {dimension_numbers = #tpu.dot_dimension_numbers<[1], [0], [0], [1], [0, 0, 1, 1], [], []>} : vector<4x48xf32>, vector<48x128xf32>, vector<4x128xf32> -> vector<4x128xf32>
    %64 = arith.subf %6, %63 : vector<4x128xf32>
    %65 = arith.negf %64 : vector<4x128xf32>
    %66 = math.exp %65 : vector<4x128xf32>
    %cst_58 = arith.constant 1.000000e+00 : f32
    %67 = vector.broadcast %cst_58 : f32 to vector<4x128xf32>
    %68 = arith.addf %67, %66 : vector<4x128xf32>
    %69 = arith.divf %67, %68 : vector<4x128xf32>
    %70 = arith.mulf %60, %69 : vector<4x128xf32>
    %71 = arith.addf %54, %70 : vector<4x128xf32>
    %72 = arith.addf %55, %69 : vector<4x128xf32>
    %73 = arith.divf %71, %72 : vector<4x128xf32>
    %c0_59 = arith.constant 0 : index
    %c0_60 = arith.constant 0 : index
    %74 = vector.load %arg8[%c0_59, %c0_60] : memref<32x4xf32, #tpu.memory_space<vmem>>, vector<32x4xf32>
    %cst_61 = arith.constant dense<0.000000e+00> : vector<32x128xf32>
    %75 = tpu.matmul %74, %73, %cst_61 {dimension_numbers = #tpu.dot_dimension_numbers<[1], [0], [0], [1], [0, 0, 1, 1], [], []>} : vector<32x4xf32>, vector<4x128xf32>, vector<32x128xf32> -> vector<32x128xf32>
    %c0_62 = arith.constant 0 : index
    %c0_63 = arith.constant 0 : index
    %76 = vector.load %arg9[%c0_62, %c0_63] : memref<32x4xf32, #tpu.memory_space<vmem>>, vector<32x4xf32>
    %cst_64 = arith.constant dense<0.000000e+00> : vector<32x128xf32>
    %77 = tpu.matmul %76, %1, %cst_64 {dimension_numbers = #tpu.dot_dimension_numbers<[1], [0], [0], [1], [0, 0, 1, 1], [], []>} : vector<32x4xf32>, vector<4x128xf32>, vector<32x128xf32> -> vector<32x128xf32>
    %78 = arith.addf %75, %77 : vector<32x128xf32>
    %c0_65 = arith.constant 0 : index
    %c0_66 = arith.constant 0 : index
    %79 = vector.load %arg10[%c0_65, %c0_66] : memref<32x1xf32, #tpu.memory_space<vmem>>, vector<32x1xf32>
    %80 = vector.broadcast %79 : vector<32x1xf32> to vector<32x128xf32>
    %81 = arith.addf %78, %80 : vector<32x128xf32>
    %cst_67 = arith.constant 0.000000e+00 : f32
    %82 = vector.broadcast %cst_67 : f32 to vector<32x128xf32>
    %83 = arith.maximumf %81, %82 : vector<32x128xf32>
    %c0_68 = arith.constant 0 : index
    %c0_69 = arith.constant 0 : index
    %c0_70 = arith.constant 0 : index
    %84 = vector.load %arg11[%c0_68, %c0_69, %c0_70] : memref<1x32x128xf32, #tpu.memory_space<vmem>>, vector<1x32x128xf32>
    %85 = vector.shape_cast %84 : vector<1x32x128xf32> to vector<32x128xf32>
    %86 = vector.shape_cast %83 : vector<32x128xf32> to vector<1x32x128xf32>
    tpu.vector_store %arg11[%c0_68, %c0_69, %c0_70], %86 {strides = array<i32>} : memref<1x32x128xf32, #tpu.memory_space<vmem>>, vector<1x32x128xf32>,
    return
  }
  func.func @transform_0(%arg0: i32, %arg1: i32) -> (i32, i32, i32) {
    %c0_i32 = arith.constant 0 : i32
    %c0_i32_0 = arith.constant 0 : i32
    return %arg1, %c0_i32, %arg0 : i32, i32, i32
  }
  func.func @transform_1(%arg0: i32, %arg1: i32) -> (i32, i32, i32) {
    %c0_i32 = arith.constant 0 : i32
    %c0_i32_0 = arith.constant 0 : i32
    %c0_i32_1 = arith.constant 0 : i32
    return %c0_i32, %c0_i32_0, %arg0 : i32, i32, i32
  }
  func.func @transform_2(%arg0: i32, %arg1: i32) -> (i32, i32, i32, i32) {
    %c0_i32 = arith.constant 0 : i32
    %c0_i32_0 = arith.constant 0 : i32
    %c0_i32_1 = arith.constant 0 : i32
    %c0_i32_2 = arith.constant 0 : i32
    return %arg1, %c0_i32, %c0_i32_0, %c0_i32_1 : i32, i32, i32, i32
  }
  func.func @transform_3(%arg0: i32, %arg1: i32) -> (i32, i32, i32, i32) {
    %c0_i32 = arith.constant 0 : i32
    %c0_i32_0 = arith.constant 0 : i32
    %c0_i32_1 = arith.constant 0 : i32
    %c0_i32_2 = arith.constant 0 : i32
    return %arg1, %c0_i32, %c0_i32_0, %c0_i32_1 : i32, i32, i32, i32
  }
  func.func @transform_4(%arg0: i32, %arg1: i32) -> (i32, i32) {
    %c0_i32 = arith.constant 0 : i32
    %c0_i32_0 = arith.constant 0 : i32
    %c0_i32_1 = arith.constant 0 : i32
    return %c0_i32, %c0_i32_0 : i32, i32
  }
  func.func @transform_5(%arg0: i32, %arg1: i32) -> (i32, i32) {
    %c0_i32 = arith.constant 0 : i32
    %c0_i32_0 = arith.constant 0 : i32
    %c0_i32_1 = arith.constant 0 : i32
    return %c0_i32, %c0_i32_0 : i32, i32
  }
  func.func @transform_6(%arg0: i32, %arg1: i32) -> (i32, i32) {
    %c0_i32 = arith.constant 0 : i32
    %c0_i32_0 = arith.constant 0 : i32
    %c0_i32_1 = arith.constant 0 : i32
    return %c0_i32, %c0_i32_0 : i32, i32
  }
  func.func @transform_7(%arg0: i32, %arg1: i32) -> (i32, i32) {
    %c0_i32 = arith.constant 0 : i32
    %c0_i32_0 = arith.constant 0 : i32
    %c0_i32_1 = arith.constant 0 : i32
    return %c0_i32, %c0_i32_0 : i32, i32
  }
  func.func @transform_8(%arg0: i32, %arg1: i32) -> (i32, i32) {
    %c0_i32 = arith.constant 0 : i32
    %c0_i32_0 = arith.constant 0 : i32
    %c0_i32_1 = arith.constant 0 : i32
    return %c0_i32, %c0_i32_0 : i32, i32
  }
  func.func @transform_9(%arg0: i32, %arg1: i32) -> (i32, i32, i32) {
    %c0_i32 = arith.constant 0 : i32
    %c0_i32_0 = arith.constant 0 : i32
    return %arg1, %c0_i32, %arg0 : i32, i32, i32
  }
}

</mosaic_0001>

<bundles_post_ra>
// kernel: contextual_module_forward.1
= control target key start
LH: loop header
LB: loop body
LE: loop exit
PB: predicated region body
PF: predicated region fallthrough
CT: control target
= control target key end

     0   :  { %s2566_s0 = inlined_call_operand.vmem [shape: f32[2,4,256], index: 0, kind: input, shape index: {}]   ;;  %s2567_s1 = inlined_call_operand.vmem [shape: f32[4,48,256], index: 1, kind: input, shape index: {}]   ;;  %s2568_s2 = inlined_call_operand.vmem [shape: f32[2,4,4,48], index: 2, kind: input, shape index: {}]   ;;  %s2569_s3 = inlined_call_operand.vmem [shape: f32[2,4,4,48], index: 3, kind: input, shape index: {}]   ;;  %s2570_s4 = inlined_call_operand.vmem [shape: f32[4,4], index: 4, kind: input, shape index: {}]   ;;  %s2571_s5 = inlined_call_operand.vmem [shape: f32[4,1], index: 5, kind: input, shape index: {}]   ;;  %s2572_s6 = inlined_call_operand.vmem [shape: f32[32,4], index: 6, kind: input, shape index: {}]   ;;  %s2573_s7 = inlined_call_operand.vmem [shape: f32[32,4], index: 7, kind: input, shape index: {}]   ;;  %s2574_s8 = inlined_call_operand.vmem [shape: f32[32,1], index: 8, kind: input, shape index: {}]   ;;  %s2575_s9 = inlined_call_operand.vmem [shape: f32[2,32,256], index: 9, kind: output, shape index: {}]  }
   0x1   :  { %2580 = sst [smem:[#allocation9_spill]] %s2567_s1 }
   0x2   :  { %s2199_s30 = smov 0   ;;  %s2201_s10 = smov 0  }
   0x3   :  { %s2203_s11 = smov 0   ;;  %s2205_s12 = smov 0  }
   0x4   :  { %s2207_s13 = smov 0   ;;  %s2209_s14 = smov 0  }
   0x5   :  { %s2211_s15 = smov 0   ;;  %s2213_s16 = smov 0  }
   0x6   :  { %s2215_s17 = smov 0  }
   0x7 LB: > { %2581 = sst [smem:[#allocation4_spill]] %s2136_s15  ;;  %s28_s18 = sadd.s32 1, %s2136_s15  ;;  %s2144_s17 = sphi %s2215_s17, %s19_s17   ;;  %s2140_s16 = sphi %s2213_s16, %s2593_s16   ;;  %s2136_s15 = sphi %s2211_s15, %s2592_s15   ;;  %s2132_s14 = sphi %s2209_s14, %s2599_s14   ;;  %s2128_s13 = sphi %s2207_s13, %s2598_s13   ;;  %s2124_s12 = sphi %s2205_s12, %s2597_s12   ;;  %s2120_s11 = sphi %s2203_s11, %s2596_s11   ;;  %s2116_s10 = sphi %s2201_s10, %s2595_s10   ;;  %s2112_s30 = sphi %s2199_s30, %s2594_s30  }
   0x8   : > { %2582 = sst [smem:[#allocation5_spill]] %s2140_s16  ;;  %p29_p0 = scmp.ge.s32.totalorder %s28_s18, 2 }
   0x9   : > { %s31_s19 = sadd.s32 1, %s2140_s16  ;;  %p73_p1 = scmp.ne.s32.totalorder %s2124_s12, %s2120_s11 }
   0xa   : > { %s2601_s18 = smov (%p29_p0, %s28_s18), 0  ;;  %s2603_s19 = smov (!%p29_p0, %s31_s19), %s2140_s16 }
   0xb   : > { %2583 = sst [smem:[#allocation6_spill]] %s2601_s18  ;;  %s1700_s20 = sadd.s32 4294967295, %s2144_s17  }
   0xc   : > { %p74_p2 = scmp.eq.s32.totalorder %s2144_s17, 0  ;;  %p33_p3 = scmp.ge.s32.totalorder %s2603_s19, 2 }
   0xd   : > { %s246_s21 = ssub.s32 %s2136_s15, %s2601_s18  ;;  %p261_p5 = scmp.ne.s32.totalorder %s2116_s10, %s2112_s30 }
   0xe   : > { %p2255_p4 = por %p74_p2, %p73_p1  ;;  %s2605_s19 = smov (%p33_p3, %s2603_s19), 0 }
   0xf   : > { %2585 = sst [smem:[#allocation7_spill]] %s2605_s19  ;;  %s66_s23 = sadd.s32 1, %s2124_s12 }
  0x10   : > { %p262_p6 = scmp.eq.s32.totalorder %s1700_s20, 3  ;;  %s63_s24 = ssub.s32 %s2140_s16, %s2605_s19 }
  0x11   : > { %s251_s25 = sadd.s32 1, %s2116_s10  ;;  %p64_p7 = scmp.eq.s32.totalorder %s63_s24, 0 }
  0x12   : > { %s248_s26 = sor.u32 %s246_s21, %s63_s24  ;;  %p2267_p9 = por %p262_p6, %p261_p5 }
  0x13   : > { %p249_p8 = scmp.eq.s32.totalorder %s248_s26, 0  ;;  %p1703_p10 = scmp.ge.s32.totalorder %s2144_s17, 4 }
  0x14   : > { %s2272_s28 = scalar_select %p64_p7, %s2124_s12, %s66_s23  }
  0x15   : > { %s2275_s29 = scalar_select %p249_p8, %s2116_s10, %s251_s25  }
  0x16   : > { %2587 = sst [smem:[#allocation8_spill]] %s2272_s28  ;;  %299 = sbr.rel (%p1703_p10) target bundleno = 49 (0x31), region = 36 }
  0x1b   : > { %313 = sbr.rel (!%p2255_p4) target bundleno = 49 (0x31), region = 44  ;;  %s315_s20 = sand.u32 (%p2255_p4), 1, %s2124_s12  }
  0x1c   : > { %s1704_s19 = sshll.u32 (%p2255_p4), %s2140_s16, 3  ;;  %s1977_s21 = smul.u32 (%p2255_p4), 192, %s315_s20 }
  0x1d   : > { %s2588_s1 = sld [smem:[#allocation9_spill]] (%p2255_p4) }
  0x23   : > { %s2285_s18 = scalar_lea.vmem %s2588_s1, %s1704_s19  ;;  %s2293_s19 = scalar_lea.vmem [#allocation2], %s1977_s21 }
  0x24   : > { %v394_v0 = vld [vmem:[%s2285_s18] sm:$0xff]  ;;  %v396_v1 = vld [vmem:[%s2285_s18 + $0x10] sm:$0xff] }
  0x25   : > { %v398_v2 = vld [vmem:[%s2285_s18 + $0x20] sm:$0xff]  ;;  %v400_v3 = vld [vmem:[%s2285_s18 + $0x30] sm:$0xff]  ;;  %395 = vst [vmem:[%s2293_s19] sm:$0xff] %v394_v0  ;;  %397 = vst [vmem:[%s2293_s19 + $0x8] sm:$0xff] %v396_v1 }
  0x26   : > { %v402_v4 = vld [vmem:[%s2285_s18 + $0x40] sm:$0xff]  ;;  %v404_v5 = vld [vmem:[%s2285_s18 + $0x50] sm:$0xff]  ;;  %399 = vst [vmem:[%s2293_s19 + $0x10] sm:$0xff] %v398_v2  ;;  %401 = vst [vmem:[%s2293_s19 + $0x18] sm:$0xff] %v400_v3 }
  0x27   : > { %403 = vst [vmem:[%s2293_s19 + $0x20] sm:$0xff] %v402_v4  ;;  %405 = vst [vmem:[%s2293_s19 + $0x28] sm:$0xff] %v404_v5  ;;  %v406_v6 = vld [vmem:[%s2285_s18 + $0x60] sm:$0xff]  ;;  %v408_v7 = vld [vmem:[%s2285_s18 + $0x70] sm:$0xff] }
  0x28   : > { %v410_v8 = vld [vmem:[%s2285_s18 + $0x80] sm:$0xff]  ;;  %407 = vst [vmem:[%s2293_s19 + $0x30] sm:$0xff] %v406_v6  ;;  %409 = vst [vmem:[%s2293_s19 + $0x38] sm:$0xff] %v408_v7  ;;  %v412_v9 = vld [vmem:[%s2285_s18 + $0x90] sm:$0xff] }
  0x29   : > { %411 = vst [vmem:[%s2293_s19 + $0x40] sm:$0xff] %v410_v8  ;;  %v414_v10 = vld [vmem:[%s2285_s18 + $0xa0] sm:$0xff]  ;;  %v416_v11 = vld [vmem:[%s2285_s18 + $0xb0] sm:$0xff]  ;;  %413 = vst [vmem:[%s2293_s19 + $0x48] sm:$0xff] %v412_v9 }
  0x2a   : > { %415 = vst [vmem:[%s2293_s19 + $0x50] sm:$0xff] %v414_v10  ;;  %417 = vst [vmem:[%s2293_s19 + $0x58] sm:$0xff] %v416_v11  ;;  %v418_v12 = vld [vmem:[%s2285_s18 + $0xc0] sm:$0xff]  ;;  %v420_v13 = vld [vmem:[%s2285_s18 + $0xd0] sm:$0xff] }
  0x2b   : > { %v422_v14 = vld [vmem:[%s2285_s18 + $0xe0] sm:$0xff]  ;;  %419 = vst [vmem:[%s2293_s19 + $0x60] sm:$0xff] %v418_v12  ;;  %421 = vst [vmem:[%s2293_s19 + $0x68] sm:$0xff] %v420_v13  ;;  %v424_v15 = vld [vmem:[%s2285_s18 + $0xf0] sm:$0xff] }
  0x2c   : > { %423 = vst [vmem:[%s2293_s19 + $0x70] sm:$0xff] %v422_v14  ;;  %v426_v16 = vld [vmem:[%s2285_s18 + $0x100] sm:$0xff]  ;;  %v428_v17 = vld [vmem:[%s2285_s18 + $0x110] sm:$0xff]  ;;  %425 = vst [vmem:[%s2293_s19 + $0x78] sm:$0xff] %v424_v15 }
  0x2d   : > { %427 = vst [vmem:[%s2293_s19 + $0x80] sm:$0xff] %v426_v16  ;;  %429 = vst [vmem:[%s2293_s19 + $0x88] sm:$0xff] %v428_v17  ;;  %v430_v18 = vld [vmem:[%s2285_s18 + $0x120] sm:$0xff]  ;;  %v432_v19 = vld [vmem:[%s2285_s18 + $0x130] sm:$0xff] }
  0x2e   : > { %v434_v20 = vld [vmem:[%s2285_s18 + $0x140] sm:$0xff]  ;;  %431 = vst [vmem:[%s2293_s19 + $0x90] sm:$0xff] %v430_v18  ;;  %433 = vst [vmem:[%s2293_s19 + $0x98] sm:$0xff] %v432_v19  ;;  %v436_v21 = vld [vmem:[%s2285_s18 + $0x150] sm:$0xff] }
  0x2f   : > { %435 = vst [vmem:[%s2293_s19 + $0xa0] sm:$0xff] %v434_v20  ;;  %v438_v22 = vld [vmem:[%s2285_s18 + $0x160] sm:$0xff]  ;;  %v440_v23 = vld [vmem:[%s2285_s18 + $0x170] sm:$0xff]  ;;  %437 = vst [vmem:[%s2293_s19 + $0xa8] sm:$0xff] %v436_v21 }
  0x30   : > { %439 = vst [vmem:[%s2293_s19 + $0xb0] sm:$0xff] %v438_v22  ;;  %441 = vst [vmem:[%s2293_s19 + $0xb8] sm:$0xff] %v440_v23 }
  0x31 PF: > { %p1705_p11 = scmp.ge.s32.totalorder %s2144_s17, 1  ;;  %p462_p12 = scmp.lt.s32.totalorder %s2144_s17, 5 }
  0x33   : > { %p463_p13 = pnand %p1705_p11, %p462_p12 }
  0x34   : > { %p521_p0 = scmp.lt.s32.totalorder (!%p463_p13), %s2128_s13, 1  ;;  %p523_p1 = scmp.lt.s32.totalorder (!%p463_p13), %s2132_s14, 1 }
  0x35   : > { %466 = sbr.rel (%p463_p13) target bundleno = 576 (0x240), region = 90  ;;  %s469_s18 = sand.u32 (!%p463_p13), 1, %s2120_s11  }
  0x36   : > { %s1978_s1 = smul.u32 (!%p463_p13), 192, %s469_s18  ;;  %s518_s15 = sand.u32 (!%p463_p13), 1, %s2112_s30  }
  0x37   : > { %s1706_s16 = sshll.u32 (!%p463_p13), %s518_s15, 5 }
  0x3a   : > { %v2146_v24 = vmov 0.0   ;;  %vm2147_vm0 = vmmov 0   ;;  %s2346_s22 = scalar_select %p521_p0, %s2128_s13, 1  ;;  %v541_v25 = vld [vmem:[%s2571_s5] sm:$0xf]  ;;  %v2148_v26 = vmov 0  }
  0x3b   : > { %1836 = vmatprep.subr.mxu0 %v2146_v24  ;;  %1838 = vmatprep.mubr.msk.f32.mxu0 %vm2147_vm0, %v2146_v24  ;;  %s524_s20 = scalar_select %p523_p1, %s2132_s14, 1  ;;  %v1496_v27 = vld [vmem:[%s2574_s8] sm:$0xff]  ;;  %vm551_vm1 = vcmask 1043456   ;;  %vm547_vm2 = vcmask 31744   ;;  %vm632_vm3 = vcmask 392192   ;;  %v1499_v61 = vld [vmem:[%s2574_s8 + $0x18] sm:$0xff] }
  0x3c   : > { %1841 = vmatprep.subr.mxu1 %v2146_v24  ;;  %1853 = vmatprep.mubr.msk.f32.mxu1 %vm2147_vm0, %v2146_v24  ;;  %s1707_s21 = sshll.u32 %s2346_s22, 1  ;;  %v540_v28 = vld [vmem:[%s2570_s4] sm:$0xf]  ;;  %v1296_v0 = vld [vmem:[%s2573_s7 + $0x8] sm:$0xff]  ;;  %v1297_v2 = vld [vmem:[%s2573_s7 + $0x10] sm:$0xff]  ;;  %s1762_s30 = sshll.u32 (%p2267_p9), %s2128_s13, 3 }
  0x3d   : > { %2054 = vset.pattern.permute.xlu0 %v2148_v26  ;;  %2055 = vset.pattern.permute.xlu1 %v2148_v26  ;;  %s526_s24 = sadd.s32 %s1707_s21, %s524_s20  ;;  %s2369_s20 = scalar_lea.vmem [#allocation2], %s1978_s1  ;;  %v1295_v63 = vld [vmem:[%s2573_s7] sm:$0xff]  ;;  %v1298_v3 = vld [vmem:[%s2573_s7 + $0x18] sm:$0xff]  ;;  %v1497_v4 = vld [vmem:[%s2574_s8 + $0x8] sm:$0xff] }
  0x3e   : > { %544 = vperm.xlu0 %2054, %v541_v25   ;;  %s1708_s19 = sshll.u32 %s526_s24, 2  ;;  %v630_v30 = vld [vmem:[%s2369_s20 + $0x28] sm:$0xff]  ;;  %v629_v31 = vld [vmem:[%s2369_s20 + $0x20] sm:$0xff]  ;;  %v628_v32 = vld [vmem:[%s2369_s20 + $0x18] sm:$0xff]  ;;  %s1766_s1 = sshll.u32 %s2346_s22, 4  ;;  %1507 = vperm.xlu1 %2055, %v1497_v4  }
  0x3f   : > { %s528_s28 = scalar_lea.vmem %s2566_s0, %s1708_s19  ;;  %1842 = vmatpush3.msra.mxu1 %v630_v30  ;;  %v627_v33 = vld [vmem:[%s2369_s20 + $0x10] sm:$0xff]  ;;  %v626_v34 = vld [vmem:[%s2369_s20 + $0x8] sm:$0xff]  ;;  %v625_v35 = vld [vmem:[%s2369_s20] sm:$0xff]  ;;  %s2399_s21 = scalar_lea.vmem %s2568_s2, %s1766_s1 }
  0x40   : > { %v2365_v29 = vld [vmem:[%s528_s28] sm:$0xf]  ;;  %1843 = vmatprep.subr.mxu1 %v2146_v24  ;;  %s2387_s28 = scalar_lea.vmem %s2569_s3, %s1766_s1  ;;  %v1723_v37 = vld [vmem:[%s2369_s20 + $0x58] sm:$0xff]  ;;  %v1722_v38 = vld [vmem:[%s2369_s20 + $0x50] sm:$0xff]  ;;  %s1540_s18 = sadd.s32 (%p2267_p9), %s2132_s14, %s1762_s30 }
  0x41   : > { %1837 = vmatpush3.msk.msra.mxu0 %vm551_vm1, %v2365_v29  ;;  %1844 = vmatpush3.msra.mxu1 %v629_v31  ;;  %v706_v36 = vld [vmem:[%s2387_s28] sm:$0xf]  ;;  %v1721_v40 = vld [vmem:[%s2369_s20 + $0x48] sm:$0xff]  ;;  %v1719_v42 = vld [vmem:[%s2369_s20 + $0x38] sm:$0xff]  ;;  %s1763_s22 = sshll.u32 (%p2267_p9), %s1540_s18, 3 }
  0x42   : > { %1502 = vperm.xlu0 %2054, %v1496_v27   ;;  %1839 = vmatmul.mubr.msk.f32.vlgmr.msra.gmra.mxu0 %vm547_vm2, %v540_v28  ;;  %v631_v39 = vld [vmem:[%s2399_s21] sm:$0xf]  ;;  %v1718_v43 = vld [vmem:[%s2369_s20 + $0x30] sm:$0xff]  ;;  %v1726_v44 = vld [vmem:[%s2387_s28 + $0x4] sm:$0xf]  ;;  %s1542_s11 = scalar_lea.vmem (%p2267_p9), %s2575_s9, %s1763_s22 }
  0x43   : > { %1856 = vmatprep.subr.mxu0 %v2146_v24  ;;  %1868 = vmatprep.mubr.msk.f32.mxu0 %vm2147_vm0, %v2146_v24  ;;  %v1720_v41 = vld [vmem:[%s2369_s20 + $0x40] sm:$0xff]  ;;  %v1734_v45 = vld [vmem:[%s2369_s20 + $0x88] sm:$0xff]  ;;  %v1732_v47 = vld [vmem:[%s2369_s20 + $0x78] sm:$0xff] }
  0x44   : > { %1857 = vmatpush3.msra.mxu0 %v630_v30  ;;  %1845 = vmatprep.subr.mxu1 %v2146_v24  ;;  %v1733_v46 = vld [vmem:[%s2369_s20 + $0x80] sm:$0xff]  ;;  %v1731_v48 = vld [vmem:[%s2369_s20 + $0x70] sm:$0xff]  ;;  %v1730_v50 = vld [vmem:[%s2369_s20 + $0x68] sm:$0xff] }
  0x45   : > { %1858 = vmatprep.subr.mxu0 %v2146_v24  ;;  %1846 = vmatpush3.msra.mxu1 %v628_v32  ;;  %v1724_v49 = vld [vmem:[%s2399_s21 + $0x4] sm:$0xf]  ;;  %v1737_v52 = vld [vmem:[%s2387_s28 + $0x8] sm:$0xf]  ;;  %v1745_v53 = vld [vmem:[%s2369_s20 + $0xb8] sm:$0xff] }
  0x46   : > { %1859 = vmatpush3.msra.mxu0 %v629_v31  ;;  %1847 = vmatprep.subr.mxu1 %v2146_v24  ;;  %v1729_v51 = vld [vmem:[%s2369_s20 + $0x60] sm:$0xff]  ;;  %v1744_v54 = vld [vmem:[%s2369_s20 + $0xb0] sm:$0xff]  ;;  %v1743_v55 = vld [vmem:[%s2369_s20 + $0xa8] sm:$0xff] }
  0x47   : > { %1860 = vmatprep.subr.mxu0 %v2146_v24  ;;  %1848 = vmatpush3.msra.mxu1 %v627_v33  ;;  %v1742_v56 = vld [vmem:[%s2369_s20 + $0xa0] sm:$0xff]  ;;  %v1741_v57 = vld [vmem:[%s2369_s20 + $0x98] sm:$0xff]  ;;  %v1740_v58 = vld [vmem:[%s2369_s20 + $0x90] sm:$0xff] }
  0x48   : > { %1861 = vmatpush3.msra.mxu0 %v628_v32  ;;  %1849 = vmatprep.subr.mxu1 %v2146_v24  ;;  %v1735_v59 = vld [vmem:[%s2399_s21 + $0x8] sm:$0xf]  ;;  %v1748_v60 = vld [vmem:[%s2387_s28 + $0xc] sm:$0xf]  ;;  %v1291_v1 = vld [vmem:[%s2572_s6] sm:$0xff]  ;;  %s520_s28 = scalar_lea.vmem [#allocation3], %s1706_s16 }
  0x49   : > { %1862 = vmatprep.subr.mxu0 %v2146_v24  ;;  %1850 = vmatpush3.msra.mxu1 %v626_v34  ;;  %v1746_v62 = vld [vmem:[%s2399_s21 + $0xc] sm:$0xf]  ;;  %v1498_v5 = vld [vmem:[%s2574_s8 + $0x10] sm:$0xff] }
  0x4a   : > { %1863 = vmatpush3.msra.mxu0 %v627_v33  ;;  %1851 = vmatprep.subr.mxu1 %v2146_v24 }
  0x4b   : > { %1864 = vmatprep.subr.mxu0 %v2146_v24  ;;  %1852 = vmatpush3.msra.mxu1 %v625_v35 }
  0x4c   : > { %1865 = vmatpush3.msra.mxu0 %v626_v34  ;;  %1854 = vmatmul.mubr.msk.f32.vlgmr.msra.gmra.mxu1 %vm632_vm3, %v631_v39 }
  0x4d   : > { %1866 = vmatprep.subr.mxu0 %v2146_v24  ;;  %1871 = vmatprep.subr.mxu1 %v2146_v24 }
  0x4e   : > { %1867 = vmatpush3.msra.mxu0 %v625_v35  ;;  %1872 = vmatpush3.msra.mxu1 %v1723_v37 }
  0x4f   : > { %1869 = vmatmul.mubr.msk.f32.vlgmr.msra.gmra.mxu0 %vm632_vm3, %v706_v36  ;;  %1886 = vmatprep.subr.mxu0 %v2146_v24 }
  0x50   : > { %1887 = vmatpush3.msra.mxu0 %v1723_v37  ;;  %1898 = vmatprep.mubr.msk.f32.mxu0 %vm2147_vm0, %v2146_v24 }
  0x51   : > { %1888 = vmatprep.subr.mxu0 %v2146_v24  ;;  %1873 = vmatprep.subr.mxu1 %v2146_v24 }
  0x52   : > { %1889 = vmatpush3.msra.mxu0 %v1722_v38  ;;  %1874 = vmatpush3.msra.mxu1 %v1722_v38 }
  0x53   : > { %1890 = vmatprep.subr.mxu0 %v2146_v24  ;;  %1875 = vmatprep.subr.mxu1 %v2146_v24 }
  0x54   : > { %1891 = vmatpush3.msra.mxu0 %v1721_v40  ;;  %1876 = vmatpush3.msra.mxu1 %v1721_v40 }
  0x55   : > { %1892 = vmatprep.subr.mxu0 %v2146_v24  ;;  %1877 = vmatprep.subr.mxu1 %v2146_v24 }
  0x56   : > { %1893 = vmatpush3.msra.mxu0 %v1720_v41  ;;  %1878 = vmatpush3.msra.mxu1 %v1720_v41 }
  0x57   : > { %1894 = vmatprep.subr.mxu0 %v2146_v24  ;;  %1879 = vmatprep.subr.mxu1 %v2146_v24 }
  0x58   : > { %1895 = vmatpush3.msra.mxu0 %v1719_v42  ;;  %1880 = vmatpush3.msra.mxu1 %v1719_v42 }
  0x59   : > { %1896 = vmatprep.subr.mxu0 %v2146_v24  ;;  %1881 = vmatprep.subr.mxu1 %v2146_v24 }
  0x5a   : > { %1897 = vmatpush3.msra.mxu0 %v1718_v43  ;;  %1882 = vmatpush3.msra.mxu1 %v1718_v43 }
  0x5b   : > { %1899 = vmatmul.mubr.msk.f32.vlgmr.msra.gmra.mxu0 %vm632_vm3, %v1726_v44  ;;  %1916 = vmatprep.subr.mxu0 %v2146_v24 }
  0x5c   : > { %1917 = vmatpush3.msra.mxu0 %v1734_v45  ;;  %1928 = vmatprep.mubr.msk.f32.mxu0 %vm2147_vm0, %v2146_v24 }
  0x5d   : > { %1918 = vmatprep.subr.mxu0 %v2146_v24  ;;  %1883 = vmatprep.mubr.msk.f32.mxu1 %vm2147_vm0, %v2146_v24 }
  0x5e   : > { %1919 = vmatpush3.msra.mxu0 %v1733_v46  ;;  %1884 = vmatmul.mubr.msk.f32.vlgmr.msra.gmra.mxu1 %vm632_vm3, %v1724_v49 }
  0x5f   : > { %1920 = vmatprep.subr.mxu0 %v2146_v24  ;;  %1901 = vmatprep.subr.mxu1 %v2146_v24 }
  0x60   : > { %1921 = vmatpush3.msra.mxu0 %v1732_v47  ;;  %1902 = vmatpush3.msra.mxu1 %v1734_v45 }
  0x61   : > { %1922 = vmatprep.subr.mxu0 %v2146_v24  ;;  %1903 = vmatprep.subr.mxu1 %v2146_v24 }
  0x62   : > { %1923 = vmatpush3.msra.mxu0 %v1731_v48  ;;  %1904 = vmatpush3.msra.mxu1 %v1733_v46 }
  0x63   : > { %1924 = vmatprep.subr.mxu0 %v2146_v24  ;;  %1905 = vmatprep.subr.mxu1 %v2146_v24 }
  0x64   : > { %1925 = vmatpush3.msra.mxu0 %v1730_v50  ;;  %1906 = vmatpush3.msra.mxu1 %v1732_v47 }
  0x65   : > { %1926 = vmatprep.subr.mxu0 %v2146_v24  ;;  %1907 = vmatprep.subr.mxu1 %v2146_v24 }
  0x66   : > { %1927 = vmatpush3.msra.mxu0 %v1729_v51  ;;  %1908 = vmatpush3.msra.mxu1 %v1731_v48 }
  0x67   : > { %1929 = vmatmul.mubr.msk.f32.vlgmr.msra.gmra.mxu0 %vm632_vm3, %v1737_v52  ;;  %1946 = vmatprep.subr.mxu0 %v2146_v24 }
  0x68   : > { %1947 = vmatpush3.msra.mxu0 %v1745_v53  ;;  %1958 = vmatprep.mubr.msk.f32.mxu0 %vm2147_vm0, %v2146_v24 }
  0x69   : > { %1948 = vmatprep.subr.mxu0 %v2146_v24  ;;  %1909 = vmatprep.subr.mxu1 %v2146_v24 }
  0x6a   : > { %1949 = vmatpush3.msra.mxu0 %v1744_v54  ;;  %1910 = vmatpush3.msra.mxu1 %v1730_v50 }
  0x6b   : > { %1950 = vmatprep.subr.mxu0 %v2146_v24  ;;  %1911 = vmatprep.subr.mxu1 %v2146_v24 }
  0x6c   : > { %1951 = vmatpush3.msra.mxu0 %v1743_v55  ;;  %1912 = vmatpush3.msra.mxu1 %v1729_v51 }
  0x6d   : > { %1952 = vmatprep.subr.mxu0 %v2146_v24  ;;  %1913 = vmatprep.mubr.msk.f32.mxu1 %vm2147_vm0, %v2146_v24 }
  0x6e   : > { %1953 = vmatpush3.msra.mxu0 %v1742_v56  ;;  %1914 = vmatmul.mubr.msk.f32.vlgmr.msra.gmra.mxu1 %vm632_vm3, %v1735_v59  ;;  %v1293_v59 = vld [vmem:[%s2572_s6 + $0x10] sm:$0xff] }
  0x6f   : > { %1954 = vmatprep.subr.mxu0 %v2146_v24  ;;  %1931 = vmatprep.subr.mxu1 %v2146_v24 }
  0x70   : > { %1955 = vmatpush3.msra.mxu0 %v1741_v57  ;;  %1932 = vmatpush3.msra.mxu1 %v1745_v53 }
  0x71   : > { %1956 = vmatprep.subr.mxu0 %v2146_v24  ;;  %1943 = vmatprep.mubr.msk.f32.mxu1 %vm2147_vm0, %v2146_v24 }
  0x72   : > { %1957 = vmatpush3.msra.mxu0 %v1740_v58  ;;  %1933 = vmatprep.subr.mxu1 %v2146_v24 }
  0x73   : > { %1959 = vmatmul.mubr.msk.f32.vlgmr.msra.gmra.mxu0 %vm632_vm3, %v1748_v60  ;;  %1517 = vperm.xlu0 %2054, %v1499_v61   ;;  %v1294_v60 = vld [vmem:[%s2572_s6 + $0x18] sm:$0xff] }
  0x74   : > { %1934 = vmatpush3.msra.mxu1 %v1744_v54  ;;  %1971 = vmatprep.mubr.msk.f32.mxu0 %vm547_vm2, %v1291_v1 }
  0x75   : > { %1935 = vmatprep.subr.mxu1 %v2146_v24  ;;  %1512 = vperm.xlu1 %2055, %v1498_v5  }
  0x76   : > { %1936 = vmatpush3.msra.mxu1 %v1743_v55 }
  0x77   : > { %1937 = vmatprep.subr.mxu1 %v2146_v24 }
  0x78   : > { %1938 = vmatpush3.msra.mxu1 %v1742_v56 }
  0x79   : > { %1939 = vmatprep.subr.mxu1 %v2146_v24 }
  0x7a   : > { %1940 = vmatpush3.msra.mxu1 %v1741_v57 }
  0x7b   : > { %1941 = vmatprep.subr.mxu1 %v2146_v24 }
  0x7c   : > { %1942 = vmatpush3.msra.mxu1 %v1740_v58  ;;  %v1292_v58 = vld [vmem:[%s2572_s6 + $0x8] sm:$0xff] }
  0x7d   : > { %1944 = vmatmul.mubr.msk.f32.vlgmr.msra.gmra.mxu1 %vm632_vm3, %v1746_v62  ;;  %1961 = vmatprep.subr.msk.mxu1 %vm551_vm1, %v2365_v29 }
  0x7e   : > { %1962 = vmatpush3.msk.msra.mxu1 %vm551_vm1, %v2365_v29  ;;  %1963 = vmatprep.mubr.msk.f32.mxu1 %vm547_vm2, %v1295_v63 }
  0x81   : > { %1964 = vmatmul.mubr.msk.f32.vlgmr.msra.gmra.mxu1 %vm547_vm2, %v1296_v0 }
  0x82   : > { %1966 = vmatprep.mubr.msk.f32.mxu1 %vm547_vm2, %v1297_v2 }
  0x85   : > { %1967 = vmatmul.mubr.msk.f32.gmra.mxu1 %vm547_vm2, %v1298_v3 }
  0xb9   : > { %v545_v14 = vpop.permute.xlu0 %544  ;;  %v1508_v2 = vpop.permute.xlu1 %1507 }
  0xbd   : > { %v1503_v63 = vpop.permute.xlu0 %1502 }
 0x102   : > { %v621_v6 = vpop.f32.mrf.mxu0 }
 0x103   : > { %v622_v16 = vadd.f32 %v621_v6, %v545_v14 }
 0x104   : > { %v1840_v7 = vpop.f32.mrf.mxu0 }
 0x10c   : > { %v702_v10 = vpop.f32.mrf.mxu1 }
 0x10e   : > { %v1855_v11 = vpop.f32.mrf.mxu1 }
 0x10f   : > { %v776_v8 = vpop.f32.mrf.mxu0 }
 0x110   : > { %v780_v19 = vsub.f32 %v622_v16, %v776_v8  ;;  %v1518_v8 = vpop.permute.xlu0 %1517 }
 0x111   : > { %v1870_v9 = vpop.f32.mrf.mxu0 }
 0x112   : > { %v1717_v24 = vmul.f32 -1.442695, %v780_v19 }
 0x11b   : > { %v941_v12 = vpop.f32.mrf.mxu0 }
 0x11c   : > { %v945_v18 = vsub.f32 %v622_v16, %v941_v12 }
 0x11d   : > { %v1900_v13 = vpop.f32.mrf.mxu0 }
 0x11e   : > { %v866_v15 = vpop.f32.mrf.mxu1  ;;  %v1728_v23 = vmul.f32 -1.442695, %v945_v18 }
 0x120   : > { %v1885_v17 = vpop.f32.mrf.mxu1  ;;  %2056 = vpow2.f32 %v1728_v23 }
 0x121   : > { %2058 = vpow2.f32 %v1717_v24  ;;  %v1513_v17 = vpop.permute.xlu1 %1512 }
 0x127   : > { %v1108_v20 = vpop.f32.mrf.mxu0 }
 0x128   : > { %v1112_v21 = vsub.f32 %v622_v16, %v1108_v20 }
 0x129   : > { %v1930_v22 = vpop.f32.mrf.mxu0 }
 0x12a   : > { %v1739_v25 = vmul.f32 -1.442695, %v1112_v21 }
 0x12c   : > { %2060 = vpow2.f32 %v1739_v25 }
 0x12d   : > { %v2057_v32 = vpop.eup %2056 }
 0x12e   : > { %v1033_v26 = vpop.f32.mrf.mxu1  ;;  %v2059_v33 = vpop.eup %2058  ;;  %v949_v35 = vadd.f32 1.0, %v2057_v32 }
 0x12f   : > { %v784_v36 = vadd.f32 1.0, %v2059_v33 }
 0x130   : > { %v1915_v29 = vpop.f32.mrf.mxu1 }
 0x133   : > { %v1275_v27 = vpop.f32.mrf.mxu0 }
 0x134   : > { %v1279_v28 = vsub.f32 %v622_v16, %v1275_v27 }
 0x135   : > { %v1960_v30 = vpop.f32.mrf.mxu0 }
 0x136   : > { %v1750_v31 = vmul.f32 -1.442695, %v1279_v28 }
 0x138   : > { %2062 = vpow2.f32 %v1750_v31 }
 0x139   : > { %v2061_v34 = vpop.eup %2060  ;;  %2064 = vrcp.f32 %v949_v35 }
 0x13a   : > { %v1116_v38 = vadd.f32 1.0, %v2061_v34  ;;  %2066 = vrcp.f32 %v784_v36 }
 0x13c   : > { %2068 = vrcp.f32 %v1116_v38 }
 0x13d   : > { %v1200_v37 = vpop.f32.mrf.mxu1 }
 0x13f   : > { %v1945_v39 = vpop.f32.mrf.mxu1 }
 0x141   : > { %v1965_v61 = vpop.f32.mrf.mxu1 }
 0x143   : > { %v1377_v62 = vpop.f32.mrf.mxu1 }
 0x145   : > { %v2063_v40 = vpop.eup %2062  ;;  %v1968_v4 = vpop.f32.mrf.mxu1 }
 0x146   : > { %v1283_v41 = vadd.f32 1.0, %v2063_v40  ;;  %v2065_v42 = vpop.eup %2064 }
 0x147   : > { %v2067_v43 = vpop.eup %2066  ;;  %v952_v49 = vmul.f32 %v2065_v42, %v866_v15  ;;  %v1387_v12 = vpop.f32.mrf.mxu1 }
 0x148   : > { %2070 = vrcp.f32 %v1283_v41  ;;  %v954_v45 = vadd.f32 %v2067_v43, %v2065_v42  ;;  %v787_v50 = vmul.f32 %v2067_v43, %v702_v10 }
 0x149   : > { %v2069_v44 = vpop.eup %2068 }
 0x14a   : > { %v1121_v46 = vadd.f32 %v2069_v44, %v954_v45  ;;  %v1119_v51 = vmul.f32 %v2069_v44, %v1033_v26  ;;  %v953_v52 = vadd.f32 %v952_v49, %v787_v50 }
 0x14c   : > { %v1120_v54 = vadd.f32 %v1119_v51, %v953_v52 }
 0x155   : > { %v2071_v47 = vpop.eup %2070 }
 0x156   : > { %v1288_v48 = vadd.f32 %v2071_v47, %v1121_v46  ;;  %v1286_v53 = vmul.f32 %v2071_v47, %v1200_v37 }
 0x158   : > { %2072 = vrcp.f32 %v1288_v48  ;;  %v1287_v55 = vadd.f32 %v1286_v53, %v1120_v54 }
 0x165   : > { %v2073_v56 = vpop.eup %2072 }
 0x166   : > { %v1290_v57 = vmul.f32 %v2073_v56, %v1287_v55 }
 0x168   : > { %1969 = vmatprep.subr.msk.mxu0 %vm551_vm1, %v1290_v57 }
 0x169   : > { %1970 = vmatpush3.msk.msra.mxu0 %vm551_vm1, %v1290_v57 }
 0x16a   : > { %1972 = vmatmul.mubr.msk.f32.vlgmr.msra.gmra.mxu0 %vm547_vm2, %v1292_v58 }
 0x16b   : > { %1974 = vmatprep.mubr.msk.f32.mxu0 %vm547_vm2, %v1293_v59 }
 0x16e   : > { %1975 = vmatmul.mubr.msk.f32.gmra.mxu0 %vm547_vm2, %v1294_v60 }
 0x22a   : > { %v1973_v0 = vpop.f32.mrf.mxu0 }
 0x22b   : > { %v1483_v1 = vadd.f32 %v1973_v0, %v1965_v61 }
 0x22c   : > { %v1477_v3 = vpop.f32.mrf.mxu0 }
 0x22d   : > { %v1478_v5 = vadd.f32 %v1477_v3, %v1377_v62  ;;  %v1521_v6 = vadd.f32 %v1508_v2, %v1483_v1 }
 0x22e   : > { %v1976_v7 = vpop.f32.mrf.mxu0 }
 0x22f   : > { %v1520_v9 = vadd.f32 %v1503_v63, %v1478_v5  ;;  %v1525_v10 = vmax.f32 %v1521_v6, 0.0  ;;  %v1493_v11 = vadd.f32 %v1976_v7, %v1968_v4 }
 0x230   : > { %v1487_v13 = vpop.f32.mrf.mxu0 }
 0x231   : > { %v1524_v14 = vmax.f32 %v1520_v9, 0.0  ;;  %1529 = vst [vmem:[%s520_s28 + $0x8] sm:$0xff] %v1525_v10  ;;  %v1523_v15 = vadd.f32 %v1518_v8, %v1493_v11  ;;  %v1488_v16 = vadd.f32 %v1487_v13, %v1387_v12 }
 0x233   : > { %1528 = vst [vmem:[%s520_s28] sm:$0xff] %v1524_v14  ;;  %v1527_v18 = vmax.f32 %v1523_v15, 0.0  ;;  %v1522_v19 = vadd.f32 %v1513_v17, %v1488_v16  ;;  %1538 = sbr.rel (!%p2267_p9) target bundleno = 576 (0x240), region = 98 }
 0x235   : > { %1531 = vst [vmem:[%s520_s28 + $0x18] sm:$0xff] %v1527_v18  ;;  %v1526_v20 = vmax.f32 %v1522_v19, 0.0 }
 0x237   : > { %1530 = vst [vmem:[%s520_s28 + $0x10] sm:$0xff] %v1526_v20 }
 0x238   : > { %v1579_v22 = vld [vmem:[%s520_s28 + $0x8] sm:$0xff] }
 0x239   : > { %1580 = vst [vmem:[%s1542_s11 + $0x10] sm:$0xff] %v1579_v22 }
 0x23a   : > { %v1577_v21 = vld [vmem:[%s520_s28] sm:$0xff] }
 0x23b   : > { %1578 = vst [vmem:[%s1542_s11] sm:$0xff] %v1577_v21 }
 0x23c   : > { %v1583_v24 = vld [vmem:[%s520_s28 + $0x18] sm:$0xff] }
 0x23d   : > { %1584 = vst [vmem:[%s1542_s11 + $0x30] sm:$0xff] %v1583_v24 }
 0x23e   : > { %v1581_v23 = vld [vmem:[%s520_s28 + $0x10] sm:$0xff] }
 0x23f   : > { %1582 = vst [vmem:[%s1542_s11 + $0x20] sm:$0xff] %v1581_v23 }
 0x240 PF: > { %s19_s17 = sadd.s32 1, %s2144_s17   ;;  %s2589_s13 = sld [smem:[#allocation8_spill]] }
 0x241   : > { %p16_p2 = scmp.ge.s32.totalorder %s19_s17, 6   ;;  %s2590_s14 = sld [smem:[#allocation4_spill]] }
 0x242   : > { %s2591_s27 = sld [smem:[#allocation5_spill]]  ;;  %s2594_s30 = smov %s2116_s10 }
 0x243   : > { %s2592_s15 = sld [smem:[#allocation6_spill]]  ;;  %s2595_s10 = smov %s2275_s29 }
 0x244   : > { %s2593_s16 = sld [smem:[#allocation7_spill]]  ;;  %s2596_s11 = smov %s2124_s12 }
 0x245   :  { %18 = sbr.rel (!%p16_p2) target bundleno = 7 (0x7), region = 185 }
 0x246   : > { %s2597_s12 = smov %s2589_s13 }
 0x247   : > { %s2598_s13 = smov %s2590_s14 }
 0x248   : > { %s2599_s14 = smov %s2591_s27 }

</bundles_post_ra>
